<compile_context>
chip_gen: v6e
topology: v6e:2x2x1
jax: 0.10.0
libtpu: 0.0.40
codegen_flags: <defaults>
</compile_context>

<pallas_src>
import functools

import jax
import jax.numpy as jnp
from jax.experimental import pallas as pl
from jax.experimental.pallas import tpu as pltpu

_LANE = 128
_SUBLANE_BF16 = 16          # bf16 packs 16 rows per sublane group
_VMEM_BUDGET = 48 * 2**20   # conservative working-set budget (fits v7x 64 MiB/TC)
_VMEM_CAP = 60 * 2**20      # never request more scoped VMEM than this

_HAS_BUFFERED = hasattr(pl, "Buffered")


def _round_up(x, m):
    return (x + m - 1) // m * m


def _pad_dim(d):
    """Pad a feature dim to 128; use 256 alignment when it costs <= ~12.5% extra
    (full 2x256x256 MXU tiles on v6e/v7x; 128 is already native on v5e)."""
    p128 = _round_up(d, _LANE)
    p256 = _round_up(d, 2 * _LANE)
    if p256 != p128 and p256 <= (p128 * 9) // 8:
        return p256
    return p128


def _resident_spec(shape):
    """BlockSpec for a grid-invariant (weights/bias) block: single-buffered."""
    if _HAS_BUFFERED:
        try:
            return pl.BlockSpec(shape, lambda i: (0, 0), pipeline_mode=pl.Buffered(1))
        except TypeError:
            pass
    return pl.BlockSpec(shape, lambda i: (0, 0))


# ---------------------------------------------------------------------------
# Fused Pallas kernel: ((x @ W1 + b1).relu() @ W2 + b2) ... @ Wn + bn
# BN already folded into (Wi, bi); Dropout is identity (eval mode).
# ---------------------------------------------------------------------------
def _make_fused_mlp_kernel(num_layers):
    def kernel(*refs):
        x_ref = refs[0]
        o_ref = refs[-1]
        h = x_ref[...]                                   # already bf16 (staged in wrapper)
        for li in range(num_layers):
            w = refs[1 + 2 * li][...]                    # (in_pad, out_pad) bf16
            b = refs[2 + 2 * li][...]                    # (1, out_pad) f32
            y = jnp.dot(h, w, preferred_element_type=jnp.float32) + b   # f32 accum + bias
            if li < num_layers - 1:
                # ReLU on the bf16 value: identical result, halves the live intermediate.
                h = jnp.maximum(y.astype(jnp.bfloat16), 0.0)
            else:
                o_ref[...] = y.astype(o_ref.dtype)
    return kernel


# ---------------------------------------------------------------------------
# One-time parameter preparation (fold BN, transpose, pad, cast to bf16)
# ---------------------------------------------------------------------------
def prepare_fused_params(params, eps=1e-5):
    prepared = []
    n_layers = len(params)
    for i, layer in enumerate(params):
        w = layer["w"]                              # PyTorch layout (out, in)
        b = layer["b"]
        out_f, in_f = w.shape
        w_t = w.T.astype(jnp.float32)               # (in, out)
        if i < n_layers - 1:
            inv_std = 1.0 / jnp.sqrt(layer["running_var"] + eps)
            scale = layer["gamma"] * inv_std                          # (out,)
            shift = layer["beta"] - layer["running_mean"] * scale     # (out,)
            w_fold = w_t * scale[None, :]
            b_fold = b * scale + shift
        else:
            w_fold = w_t
            b_fold = b
        in_pad = _pad_dim(in_f)
        out_pad = _pad_dim(out_f)
        w_p = jnp.zeros((in_pad, out_pad), jnp.float32).at[:in_f, :out_f].set(w_fold)
        b_p = jnp.zeros((1, out_pad), jnp.float32).at[:, :out_f].set(b_fold)
        prepared.append((w_p.astype(jnp.bfloat16), b_p))
    return prepared


# ---------------------------------------------------------------------------
# VMEM footprint estimate & batch tiling
# ---------------------------------------------------------------------------
def _vmem_bytes(prepared, tile_m):
    in_pad = prepared[0][0].shape[0]
    out_pad = prepared[-1][0].shape[1]
    w_bytes = sum(w.shape[0] * w.shape[1] * 2 for w, _ in prepared)   # bf16, 1-buffered
    b_bytes = sum(b.shape[1] * 4 for _, b in prepared)                # f32, 1-buffered
    x_bytes = 2 * tile_m * in_pad * 2                                 # bf16, 2-buffered
    o_bytes = 2 * tile_m * out_pad * 4                                # f32, 2-buffered
    max_feat = max(w.shape[1] for w, _ in prepared)
    act_bytes = 2 * tile_m * max_feat * 4                             # f32 temp + bf16 copy
    return w_bytes + b_bytes + x_bytes + o_bytes + act_bytes


def _choose_tile_m(n, prepared):
    n16 = _round_up(max(n, _SUBLANE_BF16), _SUBLANE_BF16)
    if n16 <= 32:
        tile_m = n16                                  # single small tile
    elif n16 <= 512:
        # two tiles so a v7x chip (2 TensorCores) can shard the "parallel" grid axis
        tile_m = _round_up((n16 + 1) // 2, _SUBLANE_BF16)
    else:
        tile_m = 256                                  # bounded padding waste (< 256 rows)
    # VMEM budget guard (critical on v7x: 64 MiB/TC): shrink tile before spilling.
    while tile_m > _SUBLANE_BF16 and _vmem_bytes(prepared, tile_m) > _VMEM_BUDGET:
        tile_m = max(_SUBLANE_BF16, _round_up(tile_m // 2, _SUBLANE_BF16))
    return tile_m


# ---------------------------------------------------------------------------
# Forward wrapper
# ---------------------------------------------------------------------------
@functools.partial(jax.jit, static_argnums=(2,))
def fused_mlp_forward(prepared, x, num_classes):
    n = x.shape[0]
    h = x.reshape(n, -1)                              # x.view(x.size(0), -1)
    in_f = h.shape[1]
    in_pad = prepared[0][0].shape[0]
    out_pad = prepared[-1][0].shape[1]

    tile_m = _choose_tile_m(n, prepared)
    n_pad = _round_up(max(n, tile_m), tile_m)

    # Pad + cast to bf16 in one wrapper-side op: halves the x-tile DMA bytes and
    # removes the per-tile cast inside the kernel. Padded rows are sliced off below.
    x_p = jnp.zeros((n_pad, in_pad), jnp.bfloat16).at[:n, :in_f].set(h.astype(jnp.bfloat16))

    num_layers = len(prepared)
    kernel = _make_fused_mlp_kernel(num_layers)

    in_specs = [pl.BlockSpec((tile_m, in_pad), lambda i: (i, 0))]
    flat_inputs = [x_p]
    for w_p, b_p in prepared:
        in_specs.append(_resident_spec(w_p.shape))    # grid-invariant, single-buffered
        in_specs.append(_resident_spec(b_p.shape))
        flat_inputs.extend([w_p, b_p])

    est = _vmem_bytes(prepared, tile_m)
    vmem_limit = int(min(_VMEM_CAP, max(est + est // 2, 4 * 2**20)))

    out = pl.pallas_call(
        kernel,
        out_shape=jax.ShapeDtypeStruct((n_pad, out_pad), jnp.float32),
        grid=(n_pad // tile_m,),
        in_specs=in_specs,
        out_specs=pl.BlockSpec((tile_m, out_pad), lambda i: (i, 0)),
        compiler_params=pltpu.CompilerParams(
            dimension_semantics=("parallel",),
            vmem_limit_bytes=vmem_limit,
        ),
    )(*flat_inputs)
    return out[:n, :num_classes]


# ---------------------------------------------------------------------------
# Parameter construction (PyTorch-style init) + pure-JAX reference
# ---------------------------------------------------------------------------
def init_params(key, input_size, hidden_sizes, num_classes):
    params = []
    prev = input_size
    for hdim in hidden_sizes:
        key, kw, kb = jax.random.split(key, 3)
        bound = 1.0 / jnp.sqrt(prev)
        w = jax.random.uniform(kw, (hdim, prev), jnp.float32, -bound, bound)  # (out, in)
        b = jax.random.uniform(kb, (hdim,), jnp.float32, -bound, bound)
        key, kg, kbeta = jax.random.split(key, 3)
        gamma = 1.0 + 0.1 * jax.random.normal(kg, (hdim,), jnp.float32)
        beta = 0.1 * jax.random.normal(kbeta, (hdim,), jnp.float32)
        params.append(dict(w=w, b=b, gamma=gamma, beta=beta,
                           running_mean=jnp.zeros((hdim,), jnp.float32),
                           running_var=jnp.ones((hdim,), jnp.float32)))
        prev = hdim
    key, kw, kb = jax.random.split(key, 3)
    bound = 1.0 / jnp.sqrt(prev)
    w = jax.random.uniform(kw, (num_classes, prev), jnp.float32, -bound, bound)
    b = jax.random.uniform(kb, (num_classes,), jnp.float32, -bound, bound)
    params.append(dict(w=w, b=b))
    return params


def ref_forward(params, x, eps=1e-5):
    h = x.reshape(x.shape[0], -1)
    for layer in params[:-1]:
        y = h @ layer["w"].T + layer["b"]
        y = (y - layer["running_mean"]) / jnp.sqrt(layer["running_var"] + eps)
        y = y * layer["gamma"] + layer["beta"]
        h = jnp.maximum(y, 0.0)
    return h @ params[-1]["w"].T + params[-1]["b"]


if __name__ == "__main__":
    key = jax.random.PRNGKey(0)
    batch, H, W = 8, 16, 16
    input_size = H * W
    hidden_sizes = [128, 64]
    num_classes = 10

    key, kx, kp = jax.random.split(key, 3)
    x = jax.random.normal(kx, (batch, H, W), jnp.float32)
    params = init_params(kp, input_size, hidden_sizes, num_classes)

    prepared = prepare_fused_params(params)          # fold/transpose/pad/cast ONCE
    out = fused_mlp_forward(prepared, x, num_classes)
    out = jax.block_until_ready(out)
    assert out.shape == (batch, num_classes), out.shape

    # Sanity check against the fp32 eval-mode reference (bf16 matmul -> loose tolerance).
    ref = ref_forward(params, x)
    max_err = float(jnp.max(jnp.abs(out - ref)))
    assert jnp.allclose(out, ref, atol=5e-2, rtol=5e-2), max_err

    print("KERNEL_OK")
</pallas_src>

<mosaic_0001>
module attributes {stable_mosaic.version = 11 : i64} {
  func.func @kernel(%arg0: i32, %arg1: memref<16x256xbf16, #tpu.memory_space<vmem>>, %arg2: memref<256x128xbf16, #tpu.memory_space<vmem>>, %arg3: memref<1x128xf32, #tpu.memory_space<vmem>>, %arg4: memref<128x128xbf16, #tpu.memory_space<vmem>>, %arg5: memref<1x128xf32, #tpu.memory_space<vmem>>, %arg6: memref<128x128xbf16, #tpu.memory_space<vmem>>, %arg7: memref<1x128xf32, #tpu.memory_space<vmem>>, %arg8: memref<16x128xf32, #tpu.memory_space<vmem>>) attributes {dimension_semantics = [#tpu.dimension_semantics<parallel>], iteration_bounds = array<i64: 1>, scalar_prefetch = 0 : i64, scratch_operands = 0 : i64, tpu.core_type = #tpu.core_type<tc>, window_params = [{transform_indices = @transform_0, window_bounds = array<i64: 16, 256>}, {pipeline_mode = #tpu.pipeline_mode<synchronous>, transform_indices = @transform_1, window_bounds = array<i64: 256, 128>}, {pipeline_mode = #tpu.pipeline_mode<synchronous>, transform_indices = @transform_2, window_bounds = array<i64: 1, 128>}, {pipeline_mode = #tpu.pipeline_mode<synchronous>, transform_indices = @transform_3, window_bounds = array<i64: 128, 128>}, {pipeline_mode = #tpu.pipeline_mode<synchronous>, transform_indices = @transform_4, window_bounds = array<i64: 1, 128>}, {pipeline_mode = #tpu.pipeline_mode<synchronous>, transform_indices = @transform_5, window_bounds = array<i64: 128, 128>}, {pipeline_mode = #tpu.pipeline_mode<synchronous>, transform_indices = @transform_6, window_bounds = array<i64: 1, 128>}, {transform_indices = @transform_7, window_bounds = array<i64: 16, 128>}]} {
    %c0 = arith.constant 0 : index
    %c0_0 = arith.constant 0 : index
    %0 = vector.load %arg1[%c0, %c0_0] : memref<16x256xbf16, #tpu.memory_space<vmem>>, vector<16x256xbf16>
    %c0_1 = arith.constant 0 : index
    %c0_2 = arith.constant 0 : index
    %1 = vector.load %arg2[%c0_1, %c0_2] : memref<256x128xbf16, #tpu.memory_space<vmem>>, vector<256x128xbf16>
    %c0_3 = arith.constant 0 : index
    %c0_4 = arith.constant 0 : index
    %2 = vector.load %arg3[%c0_3, %c0_4] : memref<1x128xf32, #tpu.memory_space<vmem>>, vector<1x128xf32>
    %cst = arith.constant dense<0.000000e+00> : vector<16x128xf32>
    %3 = tpu.matmul %0, %1, %cst {dimension_numbers = #tpu.dot_dimension_numbers<[1], [0], [0], [1], [0, 0, 1, 1], [], []>} : vector<16x256xbf16>, vector<256x128xbf16>, vector<16x128xf32> -> vector<16x128xf32>
    %4 = vector.broadcast %2 : vector<1x128xf32> to vector<16x128xf32>
    %5 = arith.addf %3, %4 : vector<16x128xf32>
    %6 = arith.truncf %5 : vector<16x128xf32> to vector<16x128xbf16>
    %cst_5 = arith.constant 0.000000e+00 : bf16
    %7 = vector.broadcast %cst_5 : bf16 to vector<16x128xbf16>
    %8 = arith.maximumf %6, %7 : vector<16x128xbf16>
    %c0_6 = arith.constant 0 : index
    %c0_7 = arith.constant 0 : index
    %9 = vector.load %arg4[%c0_6, %c0_7] : memref<128x128xbf16, #tpu.memory_space<vmem>>, vector<128x128xbf16>
    %c0_8 = arith.constant 0 : index
    %c0_9 = arith.constant 0 : index
    %10 = vector.load %arg5[%c0_8, %c0_9] : memref<1x128xf32, #tpu.memory_space<vmem>>, vector<1x128xf32>
    %cst_10 = arith.constant dense<0.000000e+00> : vector<16x128xf32>
    %11 = tpu.matmul %8, %9, %cst_10 {dimension_numbers = #tpu.dot_dimension_numbers<[1], [0], [0], [1], [0, 0, 1, 1], [], []>} : vector<16x128xbf16>, vector<128x128xbf16>, vector<16x128xf32> -> vector<16x128xf32>
    %12 = vector.broadcast %10 : vector<1x128xf32> to vector<16x128xf32>
    %13 = arith.addf %11, %12 : vector<16x128xf32>
    %14 = arith.truncf %13 : vector<16x128xf32> to vector<16x128xbf16>
    %cst_11 = arith.constant 0.000000e+00 : bf16
    %15 = vector.broadcast %cst_11 : bf16 to vector<16x128xbf16>
    %16 = arith.maximumf %14, %15 : vector<16x128xbf16>
    %c0_12 = arith.constant 0 : index
    %c0_13 = arith.constant 0 : index
    %17 = vector.load %arg6[%c0_12, %c0_13] : memref<128x128xbf16, #tpu.memory_space<vmem>>, vector<128x128xbf16>
    %c0_14 = arith.constant 0 : index
    %c0_15 = arith.constant 0 : index
    %18 = vector.load %arg7[%c0_14, %c0_15] : memref<1x128xf32, #tpu.memory_space<vmem>>, vector<1x128xf32>
    %cst_16 = arith.constant dense<0.000000e+00> : vector<16x128xf32>
    %19 = tpu.matmul %16, %17, %cst_16 {dimension_numbers = #tpu.dot_dimension_numbers<[1], [0], [0], [1], [0, 0, 1, 1], [], []>} : vector<16x128xbf16>, vector<128x128xbf16>, vector<16x128xf32> -> vector<16x128xf32>
    %20 = vector.broadcast %18 : vector<1x128xf32> to vector<16x128xf32>
    %21 = arith.addf %19, %20 : vector<16x128xf32>
    %c0_17 = arith.constant 0 : index
    %c0_18 = arith.constant 0 : index
    %22 = vector.load %arg8[%c0_17, %c0_18] : memref<16x128xf32, #tpu.memory_space<vmem>>, vector<16x128xf32>
    tpu.vector_store %arg8[%c0_17, %c0_18], %21 {strides = array<i32>} : memref<16x128xf32, #tpu.memory_space<vmem>>, vector<16x128xf32>,
    return
  }
  func.func @transform_0(%arg0: i32) -> (i32, i32) {
    %c0_i32 = arith.constant 0 : i32
    %c0_i32_0 = arith.constant 0 : i32
    return %arg0, %c0_i32 : i32, i32
  }
  func.func @transform_1(%arg0: i32) -> (i32, i32) {
    %c0_i32 = arith.constant 0 : i32
    %c0_i32_0 = arith.constant 0 : i32
    %c0_i32_1 = arith.constant 0 : i32
    return %c0_i32, %c0_i32_0 : i32, i32
  }
  func.func @transform_2(%arg0: i32) -> (i32, i32) {
    %c0_i32 = arith.constant 0 : i32
    %c0_i32_0 = arith.constant 0 : i32
    %c0_i32_1 = arith.constant 0 : i32
    return %c0_i32, %c0_i32_0 : i32, i32
  }
  func.func @transform_3(%arg0: i32) -> (i32, i32) {
    %c0_i32 = arith.constant 0 : i32
    %c0_i32_0 = arith.constant 0 : i32
    %c0_i32_1 = arith.constant 0 : i32
    return %c0_i32, %c0_i32_0 : i32, i32
  }
  func.func @transform_4(%arg0: i32) -> (i32, i32) {
    %c0_i32 = arith.constant 0 : i32
    %c0_i32_0 = arith.constant 0 : i32
    %c0_i32_1 = arith.constant 0 : i32
    return %c0_i32, %c0_i32_0 : i32, i32
  }
  func.func @transform_5(%arg0: i32) -> (i32, i32) {
    %c0_i32 = arith.constant 0 : i32
    %c0_i32_0 = arith.constant 0 : i32
    %c0_i32_1 = arith.constant 0 : i32
    return %c0_i32, %c0_i32_0 : i32, i32
  }
  func.func @transform_6(%arg0: i32) -> (i32, i32) {
    %c0_i32 = arith.constant 0 : i32
    %c0_i32_0 = arith.constant 0 : i32
    %c0_i32_1 = arith.constant 0 : i32
    return %c0_i32, %c0_i32_0 : i32, i32
  }
  func.func @transform_7(%arg0: i32) -> (i32, i32) {
    %c0_i32 = arith.constant 0 : i32
    %c0_i32_0 = arith.constant 0 : i32
    return %arg0, %c0_i32 : i32, i32
  }
}

</mosaic_0001>

<bundles_post_ra>
// kernel: fused_mlp_forward.1
= control target key start
LH: loop header
LB: loop body
LE: loop exit
PB: predicated region body
PF: predicated region fallthrough
CT: control target
= control target key end

     0   :  { %v604_v1 = vmov 0.0   ;;  %vm605_vm0 = vmmov 0   ;;  %v606_v42 = vmov 0   ;;  %s782_s1 = inlined_call_operand.vmem [shape: bf16[256,128], index: 1, kind: input, shape index: {}]   ;;  %s783_s0 = inlined_call_operand.vmem [shape: bf16[16,256], index: 0, kind: input, shape index: {}]   ;;  %s784_s3 = inlined_call_operand.vmem [shape: bf16[128,128], index: 3, kind: input, shape index: {}]   ;;  %s785_s5 = inlined_call_operand.vmem [shape: bf16[128,128], index: 5, kind: input, shape index: {}]   ;;  %s786_s2 = inlined_call_operand.vmem [shape: f32[1,128], index: 2, kind: input, shape index: {}]   ;;  %s787_s4 = inlined_call_operand.vmem [shape: f32[1,128], index: 4, kind: input, shape index: {}]   ;;  %s788_s6 = inlined_call_operand.vmem [shape: f32[1,128], index: 6, kind: input, shape index: {}]   ;;  %s789_s7 = inlined_call_operand.vmem [shape: f32[16,128], index: 7, kind: output, shape index: {}]  }
   0x1   :  { %v569_v0 = vld [vmem:[%s782_s1 + $0x78] sm:$0xff]   ;;  %526 = vmatprep.subr.bf16.mxu1 %v604_v1  ;;  %v571_v3 = vld [vmem:[%s782_s1 + $0x70] sm:$0xff]   ;;  %v573_v5 = vld [vmem:[%s782_s1 + $0x68] sm:$0xff]   ;;  %542 = vmatprep.mubr.msk.bf16.mxu1 %vm605_vm0, %v604_v1 }
   0x2   :  { %v570_v2 = vld [vmem:[%s782_s1 + $0x38] sm:$0xff]   ;;  %486 = vmatprep.subr.bf16.mxu0 %v569_v0  ;;  %v572_v4 = vld [vmem:[%s782_s1 + $0x30] sm:$0xff]   ;;  %v574_v6 = vld [vmem:[%s782_s1 + $0x28] sm:$0xff]  }
   0x3   :  { %487 = vmatpush3.bf16.msra.mxu0 %v570_v2  ;;  %v575_v7 = vld [vmem:[%s782_s1 + $0x60] sm:$0xff]   ;;  %v577_v9 = vld [vmem:[%s782_s1 + $0x58] sm:$0xff]   ;;  %v579_v11 = vld [vmem:[%s782_s1 + $0x50] sm:$0xff]  }
   0x4   :  { %488 = vmatprep.subr.bf16.mxu0 %v571_v3  ;;  %v576_v8 = vld [vmem:[%s782_s1 + $0x20] sm:$0xff]   ;;  %v578_v10 = vld [vmem:[%s782_s1 + $0x18] sm:$0xff]   ;;  %v580_v12 = vld [vmem:[%s782_s1 + $0x10] sm:$0xff]  }
   0x5   :  { %v587_v13 = vld [vmem:[%s783_s0 + $0x4] ss:$8 sps:$4 sm:$0xff]   ;;  %v588_v14 = vld [vmem:[%s784_s3 + $0x38] sm:$0xff]   ;;  %v589_v16 = vld [vmem:[%s784_s3 + $0x30] sm:$0xff]  }
   0x6   :  { %v581_v15 = vld [vmem:[%s782_s1 + $0x48] sm:$0xff]   ;;  %206 = vmatprep.mubr.bf16.mxu0 %v587_v13  ;;  %527 = vmatpush3.bf16.msra.mxu1 %v588_v14  ;;  %v583_v18 = vld [vmem:[%s782_s1 + $0x40] sm:$0xff]   ;;  %v592_v23 = vld [vmem:[%s784_s3 + $0x18] sm:$0xff]  }
   0x7   :  { %489 = vmatpush3.bf16.msra.mxu0 %v572_v4  ;;  %v582_v17 = vld [vmem:[%s782_s1 + $0x8] sm:$0xff]   ;;  %528 = vmatprep.subr.bf16.mxu1 %v604_v1  ;;  %v584_v20 = vld [vmem:[%s782_s1] sm:$0xff]   ;;  %v593_v24 = vld [vmem:[%s784_s3 + $0x10] sm:$0xff]  }
   0x8   :  { %490 = vmatprep.subr.bf16.mxu0 %v573_v5  ;;  %v590_v19 = vld [vmem:[%s784_s3 + $0x28] sm:$0xff]   ;;  %v591_v21 = vld [vmem:[%s784_s3 + $0x20] sm:$0xff]   ;;  %v596_v27 = vld [vmem:[%s785_s5 + $0x38] sm:$0xff]  }
   0x9   :  { %v585_v22 = vld [vmem:[%s783_s0] ss:$8 sps:$4 sm:$0xff]   ;;  %v597_v28 = vld [vmem:[%s785_s5 + $0x30] sm:$0xff]   ;;  %v600_v31 = vld [vmem:[%s785_s5 + $0x18] sm:$0xff]  }
   0xa   :  { %529 = vmatpush3.bf16.msra.mxu1 %v589_v16  ;;  %v594_v25 = vld [vmem:[%s784_s3 + $0x8] sm:$0xff]   ;;  %v595_v26 = vld [vmem:[%s784_s3] sm:$0xff]   ;;  %v601_v44 = vld [vmem:[%s785_s5 + $0x10] sm:$0xff]  }
   0xb   :  { %491 = vmatpush3.bf16.msra.mxu0 %v574_v6  ;;  %530 = vmatprep.subr.bf16.mxu1 %v604_v1  ;;  %v598_v29 = vld [vmem:[%s785_s5 + $0x28] sm:$0xff]   ;;  %v599_v30 = vld [vmem:[%s785_s5 + $0x20] sm:$0xff]  }
   0xc   :  { %492 = vmatprep.subr.bf16.mxu0 %v575_v7  ;;  %v449_v36 = vld [vmem:[%s786_s2] ss:$0 sm:$0xff]  ;;  %v602_v45 = vld [vmem:[%s785_s5 + $0x8] sm:$0xff]  }
   0xd   :  { %v603_v46 = vld [vmem:[%s785_s5] sm:$0xff]  }
   0xe   :  { %531 = vmatpush3.bf16.msra.mxu1 %v590_v19  ;;  %v468_v48 = vld [vmem:[%s787_s4] ss:$0 sm:$0xff] }
   0xf   :  { %493 = vmatpush3.bf16.msra.mxu0 %v576_v8  ;;  %532 = vmatprep.subr.bf16.mxu1 %v604_v1  ;;  %v477_v56 = vld [vmem:[%s788_s6] ss:$0 sm:$0xff] }
  0x10   :  { %494 = vmatprep.subr.bf16.mxu0 %v577_v9 }
  0x12   :  { %533 = vmatpush3.bf16.msra.mxu1 %v591_v21 }
  0x13   :  { %495 = vmatpush3.bf16.msra.mxu0 %v578_v10  ;;  %534 = vmatprep.subr.bf16.mxu1 %v604_v1 }
  0x14   :  { %496 = vmatprep.subr.bf16.mxu0 %v579_v11 }
  0x16   :  { %535 = vmatpush3.bf16.msra.mxu1 %v592_v23 }
  0x17   :  { %497 = vmatpush3.bf16.msra.mxu0 %v580_v12  ;;  %536 = vmatprep.subr.bf16.mxu1 %v604_v1 }
  0x18   :  { %498 = vmatprep.subr.bf16.mxu0 %v581_v15 }
  0x1a   :  { %537 = vmatpush3.bf16.msra.mxu1 %v593_v24 }
  0x1b   :  { %499 = vmatpush3.bf16.msra.mxu0 %v582_v17  ;;  %538 = vmatprep.subr.bf16.mxu1 %v604_v1 }
  0x1c   :  { %500 = vmatprep.subr.bf16.mxu0 %v583_v18 }
  0x1e   :  { %539 = vmatpush3.bf16.msra.mxu1 %v594_v25 }
  0x1f   :  { %501 = vmatpush3.bf16.msra.mxu0 %v584_v20  ;;  %540 = vmatprep.subr.bf16.mxu1 %v604_v1 }
  0x20   :  { %546 = vmatprep.subr.bf16.mxu0 %v604_v1 }
  0x22   :  { %207 = vmatmul.mubr.bf16.vlgmr.msra.gmra.mxu0 %v585_v22  ;;  %541 = vmatpush3.bf16.msra.mxu1 %v595_v26 }
  0x23   :  { %562 = vmatprep.mubr.msk.bf16.mxu0 %vm605_vm0, %v604_v1  ;;  %547 = vmatpush3.bf16.msra.mxu0 %v596_v27 }
  0x24   :  { %548 = vmatprep.subr.bf16.mxu0 %v604_v1 }
  0x27   :  { %549 = vmatpush3.bf16.msra.mxu0 %v597_v28 }
  0x28   :  { %550 = vmatprep.subr.bf16.mxu0 %v604_v1 }
  0x2b   :  { %551 = vmatpush3.bf16.msra.mxu0 %v598_v29 }
  0x2c   :  { %552 = vmatprep.subr.bf16.mxu0 %v604_v1 }
  0x2f   :  { %553 = vmatpush3.bf16.msra.mxu0 %v599_v30 }
  0x30   :  { %554 = vmatprep.subr.bf16.mxu0 %v604_v1 }
  0x33   :  { %555 = vmatpush3.bf16.msra.mxu0 %v600_v31 }
  0x34   :  { %556 = vmatprep.subr.bf16.mxu0 %v604_v1 }
  0x37   :  { %557 = vmatpush3.bf16.msra.mxu0 %v601_v44 }
  0x38   :  { %558 = vmatprep.subr.bf16.mxu0 %v604_v1 }
  0x3b   :  { %559 = vmatpush3.bf16.msra.mxu0 %v602_v45 }
  0x3c   :  { %560 = vmatprep.subr.bf16.mxu0 %v604_v1 }
  0x3f   :  { %561 = vmatpush3.bf16.msra.mxu0 %v603_v46 }
  0xe2   :  { %v502_v32 = vpop.f32.mrf.mxu0 }
  0xe4   :  { %v503_v33 = vpop.f32.mrf.mxu0 }
  0xe5   :  { %v504_v35 = vadd.f32 %v503_v33, %v502_v32 }
  0xe6   :  { %v505_v34 = vpop.f32.mrf.mxu0 }
  0xe7   :  { %v209_v39 = vadd.f32 %v504_v35, %v449_v36 }
  0xe8   :  { %v506_v37 = vpop.f32.mrf.mxu0 }
  0xe9   :  { %v507_v38 = vadd.f32 %v506_v37, %v505_v34 }
  0xeb   :  { %v212_v40 = vadd.f32 %v507_v38, %v449_v36 }
  0xed   :  { %v215_v41 = vpack.c.bf16 %v212_v40, %v209_v39 }
  0xef   :  { %v216_v43 = vmax.bf16 %v606_v42, %v215_v41 }
  0xf1   :  { %543 = vmatmul.mubr.bf16.vlgmr.msra.gmra.mxu1 %v216_v43 }
 0x1b1   :  { %v322_v47 = vpop.f32.mrf.mxu1 }
 0x1b2   :  { %v323_v51 = vadd.f32 %v468_v48, %v322_v47 }
 0x1b3   :  { %v544_v49 = vpop.f32.mrf.mxu1 }
 0x1b5   :  { %v325_v50 = vpop.f32.mrf.mxu1 }
 0x1b6   :  { %v326_v52 = vadd.f32 %v468_v48, %v325_v50 }
 0x1b7   :  { %v545_v53 = vpop.f32.mrf.mxu1 }
 0x1b8   :  { %v329_v54 = vpack.c.bf16 %v326_v52, %v323_v51 }
 0x1ba   :  { %v330_v55 = vmax.bf16 %v606_v42, %v329_v54 }
 0x1bc   :  { %563 = vmatmul.mubr.bf16.vlgmr.msra.gmra.mxu0 %v330_v55 }
 0x27c   :  { %v436_v57 = vpop.f32.mrf.mxu0 }
 0x27d   :  { %v437_v58 = vadd.f32 %v477_v56, %v436_v57 }
 0x27e   :  { %v564_v59 = vpop.f32.mrf.mxu0 }
 0x27f   :  { %443 = vst [vmem:[%s789_s7] sm:$0xff] %v437_v58 }
 0x280   :  { %v439_v60 = vpop.f32.mrf.mxu0 }
 0x281   :  { %v440_v61 = vadd.f32 %v477_v56, %v439_v60 }
 0x282   :  { %v565_v62 = vpop.f32.mrf.mxu0 }
 0x283   :  { %444 = vst [vmem:[%s789_s7 + $0x8] sm:$0xff] %v440_v61 }

</bundles_post_ra>
